<compile_context>
chip_gen: v7x
topology: tpu7x:2x2x1
jax: 0.10.0
libtpu: 0.0.40
codegen_flags: <defaults>
</compile_context>

<pallas_src>
import jax
import jax.numpy as jnp
from jax.experimental import pallas as pl
from jax.experimental.pallas import tpu as pltpu


# ----------------------------- in-kernel helpers -----------------------------

def _conv1x1_rows(x, w_ref, cout, cin, use_mxu):
    """1x1 conv of x:(cin, tn) f32 with weight (cout, cin) -> (cout, tn) f32."""
    if use_mxu:
        # Only taken when min(cout, cin) >= 128 so the systolic array is used well.
        # TODO(synk): cast to bf16 on v6e/v7x for MXU peak when numerics allow.
        return jnp.dot(w_ref[...].astype(jnp.float32), x,
                       preferred_element_type=jnp.float32)
    # Small channels: VPU broadcasted multiply-adds, weight scalars from SMEM.
    rows = []
    for co in range(cout):
        acc = w_ref[co, 0] * x[0:1, :]
        for ci in range(1, cin):
            acc = acc + w_ref[co, ci] * x[ci:ci + 1, :]
        rows.append(acc)
    return jnp.concatenate(rows, axis=0)  # (cout, tn)


def _make_sum_block_kernel(plan, needs_w, use_mxu, w_cout, w_cin):
    """Build a fused SumBlock kernel for a static per-skip plan."""

    def kernel(*refs):
        i = 0
        w_ref = None
        if needs_w:
            w_ref = refs[0]
            i = 1
        prev_ref = refs[i]
        skip_refs = refs[i + 1:i + 1 + len(plan)]
        o_ref = refs[-1]

        acc = prev_ref[0].astype(jnp.float32)  # (C, tn), lane-dense in H*W
        for op, s_ref in zip(plan, skip_refs):
            s = s_ref[0].astype(jnp.float32)
            if op == "pool_prev":    # prev = ch_pool(prev); prev += skip
                acc = _conv1x1_rows(acc, w_ref, w_cout, w_cin, use_mxu) + s
            elif op == "pool_skip":  # skip = ch_pool(skip); prev += skip
                acc = acc + _conv1x1_rows(s, w_ref, w_cout, w_cin, use_mxu)
            else:                    # equal channels: prev += skip
                acc = acc + s
        o_ref[0] = acc.astype(o_ref.dtype)

    return kernel


# ------------------------------ tiling helpers --------------------------------

def _pick_tile_n(n, batch, cap=2048):
    """Largest multiple-of-128 divisor of n that is <= cap, keeping >=2 grid steps."""
    cands = [t for t in range(128, min(n, cap) + 1, 128) if n % t == 0]
    if not cands:
        return n
    tn = max(cands)
    # Keep at least 2 grid steps so both v7x TensorCores are used.
    while batch * (n // tn) < 2:
        smaller = [t for t in cands if t < tn]
        if not smaller:
            break
        tn = max(smaller)
    return tn


# --------------------------- fused SumBlock forward ----------------------------

def sum_block_forward(prev_feat, skips, ch_pool_w=None, tile_cap=2048):
    """SumBlock.forward: optional 1x1 channel pooling + skip sums, one pallas_call."""
    B, c_prev, H, W = prev_feat.shape
    HW = H * W
    for s in skips:
        assert s.shape[0] == B and s.shape[2] == H and s.shape[3] == W, (
            "SumBlock requires equal spatial resolution for all summed skips")

    # Static plan mirroring the PyTorch loop (channel counts are static).
    plan = []
    needs_w = False
    c = c_prev
    for s in skips:
        sc = s.shape[1]
        if sc < c:
            assert ch_pool_w is not None and ch_pool_w.shape == (sc, c)
            plan.append("pool_prev")
            needs_w = True
            c = sc
        elif sc > c:
            assert ch_pool_w is not None and ch_pool_w.shape == (c, sc)
            plan.append("pool_skip")
            needs_w = True
        else:
            plan.append("add")
    c_out = c

    # Channel-major, lane-dense layout: (B, C, H*W). Pure reshape, no transpose.
    hw_p = ((HW + 127) // 128) * 128

    def to_bcn(t):
        t = t.reshape(t.shape[0], t.shape[1], HW)
        if hw_p != HW:
            t = jnp.pad(t, ((0, 0), (0, 0), (0, hw_p - HW)))
        return t

    tn = _pick_tile_n(hw_p, B, cap=tile_cap)
    grid = (B, hw_p // tn)

    use_mxu = bool(needs_w and min(ch_pool_w.shape) >= 128)

    in_specs = []
    args = []
    if needs_w:
        if use_mxu:
            in_specs.append(pl.BlockSpec(ch_pool_w.shape, lambda b, j: (0, 0)))
        else:
            # Tiny weight: keep it as a scalar table in SMEM for VPU FMAs.
            in_specs.append(pl.BlockSpec(memory_space=pltpu.MemorySpace.SMEM))
        args.append(ch_pool_w)

    in_specs.append(pl.BlockSpec((1, c_prev, tn), lambda b, j: (b, 0, j)))
    args.append(to_bcn(prev_feat))
    for s in skips:
        in_specs.append(pl.BlockSpec((1, s.shape[1], tn), lambda b, j: (b, 0, j)))
        args.append(to_bcn(s))

    out_spec = pl.BlockSpec((1, c_out, tn), lambda b, j: (b, 0, j))

    # Advisory cost estimate (memory-bound op): bytes dominate.
    flops = 0
    for op in plan:
        if op in ("pool_prev", "pool_skip"):
            flops += 2 * ch_pool_w.shape[0] * ch_pool_w.shape[1] * B * HW
        flops += c_out * B * HW
    bytes_accessed = (sum(int(a.size) * a.dtype.itemsize for a in args)
                      + B * c_out * hw_p * prev_feat.dtype.itemsize)

    kernel = _make_sum_block_kernel(
        plan, needs_w, use_mxu,
        ch_pool_w.shape[0] if needs_w else 0,
        ch_pool_w.shape[1] if needs_w else 0)

    out = pl.pallas_call(
        kernel,
        out_shape=jax.ShapeDtypeStruct((B, c_out, hw_p), prev_feat.dtype),
        grid=grid,
        in_specs=in_specs,
        out_specs=out_spec,
        compiler_params=pltpu.CompilerParams(
            dimension_semantics=("parallel", "parallel"),
            vmem_limit_bytes=32 * 1024 * 1024),
        cost_estimate=pl.CostEstimate(flops=flops, transcendentals=0,
                                      bytes_accessed=bytes_accessed),
    )(*args)

    out = out[:, :, :HW].reshape(B, c_out, H, W)
    return out


# ------------------------- module forward (functional) -------------------------

def unetpp_sum_skip_forward(x, idx, skips, extra_skips, params):
    """UnetppSumSkipBlock.forward for a skip_index == 0 configuration:
    no up / sub-skip / conv sub-blocks are instantiated, only the final SumBlock
    merge. Returns (x, sub_network_tensors) exactly like the PyTorch module."""
    # TODO(synk): FixedUnpool and MultiBlockBasic (needed only when skip_index > 0)
    # are not defined in the reference snippet, so the sub-network branch is not
    # implemented.
    sub_network_tensors = None
    if idx < len(skips):
        current_skip = skips[idx]
        all_skips = [current_skip]
        x = sum_block_forward(x, all_skips, params["final_merge_w"])
        sub_network_tensors = all_skips
    return x, sub_network_tensors


# ----------------------------------- main --------------------------------------

if __name__ == "__main__":
    key = jax.random.PRNGKey(0)
    B, H, W = 2, 16, 16
    in_channels = 8
    skip_channel_list = [4, 8, 16]          # module drops the last -> [4, 8]
    skip_index = 0
    current_skip_chl = skip_channel_list[:-1][skip_index]   # 4

    kx, ks0, ks1, kw = jax.random.split(key, 4)
    x = jax.random.normal(kx, (B, in_channels, H, W), jnp.float32)
    skips = (
        jax.random.normal(ks0, (B, current_skip_chl, H, W), jnp.float32),
        jax.random.normal(ks1, (B, skip_channel_list[1], H // 2, W // 2), jnp.float32),
    )

    # final_merge SumBlock: in_channels (8) > current_skip_chl (4)
    #   -> ch_pool = Conv2d(in_channels, current_skip_chl, kernel_size=1, bias=False)
    final_merge_w = 0.1 * jax.random.normal(
        kw, (current_skip_chl, in_channels), jnp.float32)
    params = {"final_merge_w": final_merge_w}

    out, sub_tensors = unetpp_sum_skip_forward(x, 0, skips, None, params)
    out = jax.block_until_ready(out)

    # pure-JAX reference check
    ref = jnp.einsum("oc,bchw->bohw", final_merge_w, x) + skips[0]
    assert out.shape == (B, current_skip_chl, H, W)
    assert jnp.allclose(out, ref, atol=1e-4, rtol=1e-4)
    assert sub_tensors is not None and len(sub_tensors) == 1

    print("KERNEL_OK")
</pallas_src>

<mosaic_0001>
module attributes {stable_mosaic.version = 11 : i64} {
  func.func @kernel(%arg0: i32, %arg1: i32, %arg2: memref<4x8xf32, #tpu.memory_space<smem>>, %arg3: memref<1x8x256xf32, #tpu.memory_space<vmem>>, %arg4: memref<1x4x256xf32, #tpu.memory_space<vmem>>, %arg5: memref<1x4x256xf32, #tpu.memory_space<vmem>>) attributes {dimension_semantics = [#tpu.dimension_semantics<parallel>, #tpu.dimension_semantics<parallel>], iteration_bounds = array<i64: 2, 1>, scalar_prefetch = 0 : i64, scratch_operands = 0 : i64, tpu.core_type = #tpu.core_type<tc>, window_params = [{transform_indices = @transform_0, window_bounds = array<i64: 4, 8>}, {transform_indices = @transform_1, window_bounds = array<i64: 1, 8, 256>}, {transform_indices = @transform_2, window_bounds = array<i64: 1, 4, 256>}, {transform_indices = @transform_3, window_bounds = array<i64: 1, 4, 256>}]} {
    %c0 = arith.constant 0 : index
    %c0_0 = arith.constant 0 : index
    %c0_1 = arith.constant 0 : index
    %0 = vector.load %arg3[%c0, %c0_0, %c0_1] : memref<1x8x256xf32, #tpu.memory_space<vmem>>, vector<1x8x256xf32>
    %1 = vector.shape_cast %0 : vector<1x8x256xf32> to vector<8x256xf32>
    %c0_2 = arith.constant 0 : index
    %c0_3 = arith.constant 0 : index
    %c0_4 = arith.constant 0 : index
    %2 = vector.load %arg4[%c0_2, %c0_3, %c0_4] : memref<1x4x256xf32, #tpu.memory_space<vmem>>, vector<1x4x256xf32>
    %3 = vector.shape_cast %2 : vector<1x4x256xf32> to vector<4x256xf32>
    %c0_5 = arith.constant 0 : index
    %c0_6 = arith.constant 0 : index
    %4 = memref.load %arg2[%c0_5, %c0_6] : memref<4x8xf32, #tpu.memory_space<smem>>
    %5 = vector.extract_strided_slice %1 {offsets = [0, 0], sizes = [1, 256], strides = [1, 1]} : vector<8x256xf32> to vector<1x256xf32>
    %6 = vector.broadcast %4 : f32 to vector<1x256xf32>
    %7 = arith.mulf %6, %5 : vector<1x256xf32>
    %c0_7 = arith.constant 0 : index
    %c1 = arith.constant 1 : index
    %8 = memref.load %arg2[%c0_7, %c1] : memref<4x8xf32, #tpu.memory_space<smem>>
    %9 = vector.extract_strided_slice %1 {offsets = [1, 0], sizes = [1, 256], strides = [1, 1]} : vector<8x256xf32> to vector<1x256xf32>
    %10 = vector.broadcast %8 : f32 to vector<1x256xf32>
    %11 = arith.mulf %10, %9 : vector<1x256xf32>
    %12 = arith.addf %7, %11 : vector<1x256xf32>
    %c0_8 = arith.constant 0 : index
    %c2 = arith.constant 2 : index
    %13 = memref.load %arg2[%c0_8, %c2] : memref<4x8xf32, #tpu.memory_space<smem>>
    %14 = vector.extract_strided_slice %1 {offsets = [2, 0], sizes = [1, 256], strides = [1, 1]} : vector<8x256xf32> to vector<1x256xf32>
    %15 = vector.broadcast %13 : f32 to vector<1x256xf32>
    %16 = arith.mulf %15, %14 : vector<1x256xf32>
    %17 = arith.addf %12, %16 : vector<1x256xf32>
    %c0_9 = arith.constant 0 : index
    %c3 = arith.constant 3 : index
    %18 = memref.load %arg2[%c0_9, %c3] : memref<4x8xf32, #tpu.memory_space<smem>>
    %19 = vector.extract_strided_slice %1 {offsets = [3, 0], sizes = [1, 256], strides = [1, 1]} : vector<8x256xf32> to vector<1x256xf32>
    %20 = vector.broadcast %18 : f32 to vector<1x256xf32>
    %21 = arith.mulf %20, %19 : vector<1x256xf32>
    %22 = arith.addf %17, %21 : vector<1x256xf32>
    %c0_10 = arith.constant 0 : index
    %c4 = arith.constant 4 : index
    %23 = memref.load %arg2[%c0_10, %c4] : memref<4x8xf32, #tpu.memory_space<smem>>
    %24 = vector.extract_strided_slice %1 {offsets = [4, 0], sizes = [1, 256], strides = [1, 1]} : vector<8x256xf32> to vector<1x256xf32>
    %25 = vector.broadcast %23 : f32 to vector<1x256xf32>
    %26 = arith.mulf %25, %24 : vector<1x256xf32>
    %27 = arith.addf %22, %26 : vector<1x256xf32>
    %c0_11 = arith.constant 0 : index
    %c5 = arith.constant 5 : index
    %28 = memref.load %arg2[%c0_11, %c5] : memref<4x8xf32, #tpu.memory_space<smem>>
    %29 = vector.extract_strided_slice %1 {offsets = [5, 0], sizes = [1, 256], strides = [1, 1]} : vector<8x256xf32> to vector<1x256xf32>
    %30 = vector.broadcast %28 : f32 to vector<1x256xf32>
    %31 = arith.mulf %30, %29 : vector<1x256xf32>
    %32 = arith.addf %27, %31 : vector<1x256xf32>
    %c0_12 = arith.constant 0 : index
    %c6 = arith.constant 6 : index
    %33 = memref.load %arg2[%c0_12, %c6] : memref<4x8xf32, #tpu.memory_space<smem>>
    %34 = vector.extract_strided_slice %1 {offsets = [6, 0], sizes = [1, 256], strides = [1, 1]} : vector<8x256xf32> to vector<1x256xf32>
    %35 = vector.broadcast %33 : f32 to vector<1x256xf32>
    %36 = arith.mulf %35, %34 : vector<1x256xf32>
    %37 = arith.addf %32, %36 : vector<1x256xf32>
    %c0_13 = arith.constant 0 : index
    %c7 = arith.constant 7 : index
    %38 = memref.load %arg2[%c0_13, %c7] : memref<4x8xf32, #tpu.memory_space<smem>>
    %39 = vector.extract_strided_slice %1 {offsets = [7, 0], sizes = [1, 256], strides = [1, 1]} : vector<8x256xf32> to vector<1x256xf32>
    %40 = vector.broadcast %38 : f32 to vector<1x256xf32>
    %41 = arith.mulf %40, %39 : vector<1x256xf32>
    %42 = arith.addf %37, %41 : vector<1x256xf32>
    %c1_14 = arith.constant 1 : index
    %c0_15 = arith.constant 0 : index
    %43 = memref.load %arg2[%c1_14, %c0_15] : memref<4x8xf32, #tpu.memory_space<smem>>
    %44 = vector.extract_strided_slice %1 {offsets = [0, 0], sizes = [1, 256], strides = [1, 1]} : vector<8x256xf32> to vector<1x256xf32>
    %45 = vector.broadcast %43 : f32 to vector<1x256xf32>
    %46 = arith.mulf %45, %44 : vector<1x256xf32>
    %c1_16 = arith.constant 1 : index
    %c1_17 = arith.constant 1 : index
    %47 = memref.load %arg2[%c1_16, %c1_17] : memref<4x8xf32, #tpu.memory_space<smem>>
    %48 = vector.extract_strided_slice %1 {offsets = [1, 0], sizes = [1, 256], strides = [1, 1]} : vector<8x256xf32> to vector<1x256xf32>
    %49 = vector.broadcast %47 : f32 to vector<1x256xf32>
    %50 = arith.mulf %49, %48 : vector<1x256xf32>
    %51 = arith.addf %46, %50 : vector<1x256xf32>
    %c1_18 = arith.constant 1 : index
    %c2_19 = arith.constant 2 : index
    %52 = memref.load %arg2[%c1_18, %c2_19] : memref<4x8xf32, #tpu.memory_space<smem>>
    %53 = vector.extract_strided_slice %1 {offsets = [2, 0], sizes = [1, 256], strides = [1, 1]} : vector<8x256xf32> to vector<1x256xf32>
    %54 = vector.broadcast %52 : f32 to vector<1x256xf32>
    %55 = arith.mulf %54, %53 : vector<1x256xf32>
    %56 = arith.addf %51, %55 : vector<1x256xf32>
    %c1_20 = arith.constant 1 : index
    %c3_21 = arith.constant 3 : index
    %57 = memref.load %arg2[%c1_20, %c3_21] : memref<4x8xf32, #tpu.memory_space<smem>>
    %58 = vector.extract_strided_slice %1 {offsets = [3, 0], sizes = [1, 256], strides = [1, 1]} : vector<8x256xf32> to vector<1x256xf32>
    %59 = vector.broadcast %57 : f32 to vector<1x256xf32>
    %60 = arith.mulf %59, %58 : vector<1x256xf32>
    %61 = arith.addf %56, %60 : vector<1x256xf32>
    %c1_22 = arith.constant 1 : index
    %c4_23 = arith.constant 4 : index
    %62 = memref.load %arg2[%c1_22, %c4_23] : memref<4x8xf32, #tpu.memory_space<smem>>
    %63 = vector.extract_strided_slice %1 {offsets = [4, 0], sizes = [1, 256], strides = [1, 1]} : vector<8x256xf32> to vector<1x256xf32>
    %64 = vector.broadcast %62 : f32 to vector<1x256xf32>
    %65 = arith.mulf %64, %63 : vector<1x256xf32>
    %66 = arith.addf %61, %65 : vector<1x256xf32>
    %c1_24 = arith.constant 1 : index
    %c5_25 = arith.constant 5 : index
    %67 = memref.load %arg2[%c1_24, %c5_25] : memref<4x8xf32, #tpu.memory_space<smem>>
    %68 = vector.extract_strided_slice %1 {offsets = [5, 0], sizes = [1, 256], strides = [1, 1]} : vector<8x256xf32> to vector<1x256xf32>
    %69 = vector.broadcast %67 : f32 to vector<1x256xf32>
    %70 = arith.mulf %69, %68 : vector<1x256xf32>
    %71 = arith.addf %66, %70 : vector<1x256xf32>
    %c1_26 = arith.constant 1 : index
    %c6_27 = arith.constant 6 : index
    %72 = memref.load %arg2[%c1_26, %c6_27] : memref<4x8xf32, #tpu.memory_space<smem>>
    %73 = vector.extract_strided_slice %1 {offsets = [6, 0], sizes = [1, 256], strides = [1, 1]} : vector<8x256xf32> to vector<1x256xf32>
    %74 = vector.broadcast %72 : f32 to vector<1x256xf32>
    %75 = arith.mulf %74, %73 : vector<1x256xf32>
    %76 = arith.addf %71, %75 : vector<1x256xf32>
    %c1_28 = arith.constant 1 : index
    %c7_29 = arith.constant 7 : index
    %77 = memref.load %arg2[%c1_28, %c7_29] : memref<4x8xf32, #tpu.memory_space<smem>>
    %78 = vector.extract_strided_slice %1 {offsets = [7, 0], sizes = [1, 256], strides = [1, 1]} : vector<8x256xf32> to vector<1x256xf32>
    %79 = vector.broadcast %77 : f32 to vector<1x256xf32>
    %80 = arith.mulf %79, %78 : vector<1x256xf32>
    %81 = arith.addf %76, %80 : vector<1x256xf32>
    %c2_30 = arith.constant 2 : index
    %c0_31 = arith.constant 0 : index
    %82 = memref.load %arg2[%c2_30, %c0_31] : memref<4x8xf32, #tpu.memory_space<smem>>
    %83 = vector.extract_strided_slice %1 {offsets = [0, 0], sizes = [1, 256], strides = [1, 1]} : vector<8x256xf32> to vector<1x256xf32>
    %84 = vector.broadcast %82 : f32 to vector<1x256xf32>
    %85 = arith.mulf %84, %83 : vector<1x256xf32>
    %c2_32 = arith.constant 2 : index
    %c1_33 = arith.constant 1 : index
    %86 = memref.load %arg2[%c2_32, %c1_33] : memref<4x8xf32, #tpu.memory_space<smem>>
    %87 = vector.extract_strided_slice %1 {offsets = [1, 0], sizes = [1, 256], strides = [1, 1]} : vector<8x256xf32> to vector<1x256xf32>
    %88 = vector.broadcast %86 : f32 to vector<1x256xf32>
    %89 = arith.mulf %88, %87 : vector<1x256xf32>
    %90 = arith.addf %85, %89 : vector<1x256xf32>
    %c2_34 = arith.constant 2 : index
    %c2_35 = arith.constant 2 : index
    %91 = memref.load %arg2[%c2_34, %c2_35] : memref<4x8xf32, #tpu.memory_space<smem>>
    %92 = vector.extract_strided_slice %1 {offsets = [2, 0], sizes = [1, 256], strides = [1, 1]} : vector<8x256xf32> to vector<1x256xf32>
    %93 = vector.broadcast %91 : f32 to vector<1x256xf32>
    %94 = arith.mulf %93, %92 : vector<1x256xf32>
    %95 = arith.addf %90, %94 : vector<1x256xf32>
    %c2_36 = arith.constant 2 : index
    %c3_37 = arith.constant 3 : index
    %96 = memref.load %arg2[%c2_36, %c3_37] : memref<4x8xf32, #tpu.memory_space<smem>>
    %97 = vector.extract_strided_slice %1 {offsets = [3, 0], sizes = [1, 256], strides = [1, 1]} : vector<8x256xf32> to vector<1x256xf32>
    %98 = vector.broadcast %96 : f32 to vector<1x256xf32>
    %99 = arith.mulf %98, %97 : vector<1x256xf32>
    %100 = arith.addf %95, %99 : vector<1x256xf32>
    %c2_38 = arith.constant 2 : index
    %c4_39 = arith.constant 4 : index
    %101 = memref.load %arg2[%c2_38, %c4_39] : memref<4x8xf32, #tpu.memory_space<smem>>
    %102 = vector.extract_strided_slice %1 {offsets = [4, 0], sizes = [1, 256], strides = [1, 1]} : vector<8x256xf32> to vector<1x256xf32>
    %103 = vector.broadcast %101 : f32 to vector<1x256xf32>
    %104 = arith.mulf %103, %102 : vector<1x256xf32>
    %105 = arith.addf %100, %104 : vector<1x256xf32>
    %c2_40 = arith.constant 2 : index
    %c5_41 = arith.constant 5 : index
    %106 = memref.load %arg2[%c2_40, %c5_41] : memref<4x8xf32, #tpu.memory_space<smem>>
    %107 = vector.extract_strided_slice %1 {offsets = [5, 0], sizes = [1, 256], strides = [1, 1]} : vector<8x256xf32> to vector<1x256xf32>
    %108 = vector.broadcast %106 : f32 to vector<1x256xf32>
    %109 = arith.mulf %108, %107 : vector<1x256xf32>
    %110 = arith.addf %105, %109 : vector<1x256xf32>
    %c2_42 = arith.constant 2 : index
    %c6_43 = arith.constant 6 : index
    %111 = memref.load %arg2[%c2_42, %c6_43] : memref<4x8xf32, #tpu.memory_space<smem>>
    %112 = vector.extract_strided_slice %1 {offsets = [6, 0], sizes = [1, 256], strides = [1, 1]} : vector<8x256xf32> to vector<1x256xf32>
    %113 = vector.broadcast %111 : f32 to vector<1x256xf32>
    %114 = arith.mulf %113, %112 : vector<1x256xf32>
    %115 = arith.addf %110, %114 : vector<1x256xf32>
    %c2_44 = arith.constant 2 : index
    %c7_45 = arith.constant 7 : index
    %116 = memref.load %arg2[%c2_44, %c7_45] : memref<4x8xf32, #tpu.memory_space<smem>>
    %117 = vector.extract_strided_slice %1 {offsets = [7, 0], sizes = [1, 256], strides = [1, 1]} : vector<8x256xf32> to vector<1x256xf32>
    %118 = vector.broadcast %116 : f32 to vector<1x256xf32>
    %119 = arith.mulf %118, %117 : vector<1x256xf32>
    %120 = arith.addf %115, %119 : vector<1x256xf32>
    %c3_46 = arith.constant 3 : index
    %c0_47 = arith.constant 0 : index
    %121 = memref.load %arg2[%c3_46, %c0_47] : memref<4x8xf32, #tpu.memory_space<smem>>
    %122 = vector.extract_strided_slice %1 {offsets = [0, 0], sizes = [1, 256], strides = [1, 1]} : vector<8x256xf32> to vector<1x256xf32>
    %123 = vector.broadcast %121 : f32 to vector<1x256xf32>
    %124 = arith.mulf %123, %122 : vector<1x256xf32>
    %c3_48 = arith.constant 3 : index
    %c1_49 = arith.constant 1 : index
    %125 = memref.load %arg2[%c3_48, %c1_49] : memref<4x8xf32, #tpu.memory_space<smem>>
    %126 = vector.extract_strided_slice %1 {offsets = [1, 0], sizes = [1, 256], strides = [1, 1]} : vector<8x256xf32> to vector<1x256xf32>
    %127 = vector.broadcast %125 : f32 to vector<1x256xf32>
    %128 = arith.mulf %127, %126 : vector<1x256xf32>
    %129 = arith.addf %124, %128 : vector<1x256xf32>
    %c3_50 = arith.constant 3 : index
    %c2_51 = arith.constant 2 : index
    %130 = memref.load %arg2[%c3_50, %c2_51] : memref<4x8xf32, #tpu.memory_space<smem>>
    %131 = vector.extract_strided_slice %1 {offsets = [2, 0], sizes = [1, 256], strides = [1, 1]} : vector<8x256xf32> to vector<1x256xf32>
    %132 = vector.broadcast %130 : f32 to vector<1x256xf32>
    %133 = arith.mulf %132, %131 : vector<1x256xf32>
    %134 = arith.addf %129, %133 : vector<1x256xf32>
    %c3_52 = arith.constant 3 : index
    %c3_53 = arith.constant 3 : index
    %135 = memref.load %arg2[%c3_52, %c3_53] : memref<4x8xf32, #tpu.memory_space<smem>>
    %136 = vector.extract_strided_slice %1 {offsets = [3, 0], sizes = [1, 256], strides = [1, 1]} : vector<8x256xf32> to vector<1x256xf32>
    %137 = vector.broadcast %135 : f32 to vector<1x256xf32>
    %138 = arith.mulf %137, %136 : vector<1x256xf32>
    %139 = arith.addf %134, %138 : vector<1x256xf32>
    %c3_54 = arith.constant 3 : index
    %c4_55 = arith.constant 4 : index
    %140 = memref.load %arg2[%c3_54, %c4_55] : memref<4x8xf32, #tpu.memory_space<smem>>
    %141 = vector.extract_strided_slice %1 {offsets = [4, 0], sizes = [1, 256], strides = [1, 1]} : vector<8x256xf32> to vector<1x256xf32>
    %142 = vector.broadcast %140 : f32 to vector<1x256xf32>
    %143 = arith.mulf %142, %141 : vector<1x256xf32>
    %144 = arith.addf %139, %143 : vector<1x256xf32>
    %c3_56 = arith.constant 3 : index
    %c5_57 = arith.constant 5 : index
    %145 = memref.load %arg2[%c3_56, %c5_57] : memref<4x8xf32, #tpu.memory_space<smem>>
    %146 = vector.extract_strided_slice %1 {offsets = [5, 0], sizes = [1, 256], strides = [1, 1]} : vector<8x256xf32> to vector<1x256xf32>
    %147 = vector.broadcast %145 : f32 to vector<1x256xf32>
    %148 = arith.mulf %147, %146 : vector<1x256xf32>
    %149 = arith.addf %144, %148 : vector<1x256xf32>
    %c3_58 = arith.constant 3 : index
    %c6_59 = arith.constant 6 : index
    %150 = memref.load %arg2[%c3_58, %c6_59] : memref<4x8xf32, #tpu.memory_space<smem>>
    %151 = vector.extract_strided_slice %1 {offsets = [6, 0], sizes = [1, 256], strides = [1, 1]} : vector<8x256xf32> to vector<1x256xf32>
    %152 = vector.broadcast %150 : f32 to vector<1x256xf32>
    %153 = arith.mulf %152, %151 : vector<1x256xf32>
    %154 = arith.addf %149, %153 : vector<1x256xf32>
    %c3_60 = arith.constant 3 : index
    %c7_61 = arith.constant 7 : index
    %155 = memref.load %arg2[%c3_60, %c7_61] : memref<4x8xf32, #tpu.memory_space<smem>>
    %156 = vector.extract_strided_slice %1 {offsets = [7, 0], sizes = [1, 256], strides = [1, 1]} : vector<8x256xf32> to vector<1x256xf32>
    %157 = vector.broadcast %155 : f32 to vector<1x256xf32>
    %158 = arith.mulf %157, %156 : vector<1x256xf32>
    %159 = arith.addf %154, %158 : vector<1x256xf32>
    %160 = tpu.concatenate %42, %81, %120, %159 in 0 : vector<1x256xf32>, vector<1x256xf32>, vector<1x256xf32>, vector<1x256xf32> -> vector<4x256xf32>
    %161 = arith.addf %160, %3 : vector<4x256xf32>
    %c0_62 = arith.constant 0 : index
    %c0_63 = arith.constant 0 : index
    %c0_64 = arith.constant 0 : index
    %162 = vector.load %arg5[%c0_62, %c0_63, %c0_64] : memref<1x4x256xf32, #tpu.memory_space<vmem>>, vector<1x4x256xf32>
    %163 = vector.shape_cast %162 : vector<1x4x256xf32> to vector<4x256xf32>
    %164 = vector.shape_cast %161 : vector<4x256xf32> to vector<1x4x256xf32>
    tpu.vector_store %arg5[%c0_62, %c0_63, %c0_64], %164 {strides = array<i32>} : memref<1x4x256xf32, #tpu.memory_space<vmem>>, vector<1x4x256xf32>,
    return
  }
  func.func @transform_0(%arg0: i32, %arg1: i32) -> (i32, i32) {
    %c0_i32 = arith.constant 0 : i32
    %c0_i32_0 = arith.constant 0 : i32
    %c0_i32_1 = arith.constant 0 : i32
    return %c0_i32, %c0_i32_0 : i32, i32
  }
  func.func @transform_1(%arg0: i32, %arg1: i32) -> (i32, i32, i32) {
    %c0_i32 = arith.constant 0 : i32
    %c0_i32_0 = arith.constant 0 : i32
    return %arg0, %c0_i32, %arg1 : i32, i32, i32
  }
  func.func @transform_2(%arg0: i32, %arg1: i32) -> (i32, i32, i32) {
    %c0_i32 = arith.constant 0 : i32
    %c0_i32_0 = arith.constant 0 : i32
    return %arg0, %c0_i32, %arg1 : i32, i32, i32
  }
  func.func @transform_3(%arg0: i32, %arg1: i32) -> (i32, i32, i32) {
    %c0_i32 = arith.constant 0 : i32
    %c0_i32_0 = arith.constant 0 : i32
    return %arg0, %c0_i32, %arg1 : i32, i32, i32
  }
}

</mosaic_0001>

<bundles_post_ra>
// kernel: tpu_custom_call.1
= control target key start
LH: loop header
LB: loop body
LE: loop exit
PB: predicated region body
PF: predicated region fallthrough
CT: control target
= control target key end

     0   :  { %8 = vsyncpa [#allocation5], 0  ;;  %s1533_s0 = inlined_call_operand.hbm [shape: f32[4,8], index: 0, kind: input, shape index: {}]   ;;  %s1534_s1 = inlined_call_operand.hbm [shape: f32[2,8,256], index: 1, kind: input, shape index: {}]   ;;  %s1535_s2 = inlined_call_operand.hbm [shape: f32[2,4,256], index: 2, kind: input, shape index: {}]   ;;  %s1536_s3 = inlined_call_operand.hbm [shape: f32[2,4,256], index: 3, kind: output, shape index: {}]  }
   0x1   :  { %9 = vsyncpa [#allocation3], 0 }
   0x2   :  { %11 = vsyncpa [#allocation3 + $0x1], 0 }
   0x3   :  { %12 = vsyncpa [#allocation8], 0 }
   0x4   :  { %14 = vsyncpa [#allocation8 + $0x1], 0 }
   0x5   :  { %15 = vsyncpa [#allocation4], 0 }
   0x6   :  { %17 = vsyncpa [#allocation4 + $0x1], 0  ;;  %s1116_s12 = smov 0   ;;  %s1118_s13 = smov 0  }
   0x7   :  { %s1120_s14 = smov 0   ;;  %s1122_s15 = smov 0  }
   0x8   :  { %s1124_s16 = smov 0   ;;  %s1126_s17 = smov 0  }
   0x9 LB: > { %s793_s18 = sadd.s32 4294967295, %s1090_s17   ;;  %s794_s19 = sadd.s32 4294967294, %s1090_s17   ;;  %s1090_s17 = sphi %s1126_s17, %s23_s17   ;;  %s1086_s16 = sphi %s1124_s16, %s1559_s16   ;;  %s1082_s15 = sphi %s1122_s15, %s1558_s15   ;;  %s1078_s14 = sphi %s1120_s14, %s1557_s14   ;;  %s1074_s13 = sphi %s1118_s13, %s1556_s13   ;;  %s1070_s12 = sphi %s1116_s12, %s1555_s12  }
   0xa   : > { %s65_s20 = sadd.s32 1, %s1078_s14  ;;  %p72_p0 = scmp.ne.s32.totalorder %s1078_s14, %s1074_s13 }
   0xb   : > { %p78_p1 = scmp.ne.s32.totalorder %s1074_s13, %s1070_s12  ;;  %p1153_p2 = scmp.eq.s32.totalorder %s793_s18, 0 }
   0xc   : > { %p132_p3 = scmp.eq.s32.totalorder %s793_s18, 1  ;;  %p138_p4 = scmp.eq.s32.totalorder %s794_s19, 1 }
   0xd   : > { %s1542_s21 = scalar_select %p1153_p2, 1, 0 }
   0xe   : > { %p1159_p5 = por %p1153_p2, %p78_p1  ;;  %p795_p6 = scmp.ge.s32.totalorder %s1090_s17, 1 }
   0xf   : > { %p1167_p7 = por %p132_p3, %p72_p0  ;;  %p1171_p8 = por %p138_p4, %p78_p1 }
  0x10   : > { %s1543_s22 = scalar_select %p1159_p5, 1, 0 }
  0x11   : > { %s1544_s23 = scalar_select %p1167_p7, 1, 0 }
  0x12   : > { %s1545_s24 = scalar_select %p1171_p8, 1, 0 }
  0x13   : > { %p145_p9 = scmp.lt.s32.totalorder %s1090_s17, 3  ;;  %p73_p12 = scmp.eq.s32.totalorder %s1090_s17, 0 }
  0x14   : > { %s35_s26 = sadd.s32 1, %s1086_s16  ;;  %p874_p4 = scmp.lt.s32.totalorder %s1090_s17, 2 }
  0x15   : > { %p1177_p11 = pnand %p795_p6, %p145_p9  ;;  %p37_p5 = scmp.ge.s32.totalorder %s35_s26, 2 }
  0x16   : > { %p1188_p3 = por %p73_p12, %p72_p0  ;;  %s1198_s28 = sand.u32 1, %s1078_s14  }
  0x17   : > { %s1546_s25 = scalar_select %p1177_p11, 1, 0 }
  0x18   : > { %p858_p13 = pneg %p1177_p11  ;;  %s1561_s26 = smov (%p37_p5, %s35_s26), 0 }
  0x19   : > { %s927_s4 = scalar_lea.hbm %s1533_s0, 64 }
  0x1a   : > { %p859_p1 = pnand %p858_p13, %p1153_p2  ;;  %p928_p6 = scmp.ne.s32.totalorder %s1533_s0, %s927_s4 }
  0x1b   : > { %p934_p13 = scmp.lt.u32.totalorder %s927_s4, %s1533_s0 }
  0x1c   : > { %p929_p9 = pneg %p859_p1 }
  0x1e   : > { %p930_p0 = pnand %p929_p9, %p928_p6 }
  0x20   : > { %p931_p12 = pneg %p930_p0 }
  0x22   : > { %p936_p10 = pnand %p934_p13, %p931_p12 }
  0x24   : > { %939 = shalt.err (!%p936_p10)
}
  0x25   : > { %s1092_s9 = smov [#allocation2]   ;;  %s60_s18 = ssub.s32 %s1086_s16, %s1561_s26 }
  0x26   : > { %861 = dma.hbm_to_smem (!%p859_p1), %s1533_s0, 64, %s1092_s9, [#allocation5]  }
  0x27   : > { %p63_p5 = scmp.eq.s32.totalorder %s60_s18, 0  ;;  %s798_s19 = sshll.u32 %s1198_s28, 4 }
  0x28   : > { %s845_s29 = sshll.u32 %s1086_s16, 8  ;;  %s171_s7 = scalar_lea.vmem [#allocation6], %s798_s19 }
  0x29   : > { %s1219_s30 = scalar_select %p63_p5, %s1078_s14, %s65_s20  }
  0x2a   : > { %s1224_s6 = scalar_lea.hbm %s1534_s1, %s845_s29  ;;  %s181_s8 = sshll.u32 %s171_s7, 4  ;;  %s1226_s8 = int_to_ptr.vmem [resolvable:$true] %s181_s8 }
  0x2b   : > { %p1232_p10 = pnand %p874_p4, %p1188_p3  ;;  %s801_s20 = sshll.u32 %s1198_s28, 3 }
  0x2c   : > { %s168_s10 = scalar_lea.sflag [#allocation3], %s1198_s28  ;;  %s940_s11 = scalar_lea.hbm %s1224_s6, 256 }
  0x2d   : > { %p941_p1 = scmp.ne.s32.totalorder %s1224_s6, %s940_s11  ;;  %p942_p6 = pneg %p1232_p10 }
  0x2e   : > { %s945_s27 = scalar_lea.hbm %s1534_s1, 512  ;;  %p946_p3 = scmp.lt.u32.totalorder %s1224_s6, %s1534_s1 }
  0x2f   : > { %p943_p9 = pnand %p942_p6, %p941_p1  ;;  %p947_p4 = scmp.lt.u32.totalorder %s945_s27, %s940_s11 }
  0x30   : > { %p949_p13 = scmp.lt.u32.totalorder %s940_s11, %s1224_s6 }
  0x31   : > { %p944_p0 = pneg %p943_p9  ;;  %p948_p12 = por %p947_p4, %p946_p3 }
  0x33   : > { %p950_p5 = por %p949_p13, %p948_p12 }
  0x35   : > { %p951_p8 = pnand %p950_p5, %p944_p0 }
  0x37   : > { %954 = shalt.err (!%p951_p8)
}
  0x38   : > { %s955_s5 = scalar_lea.vmem %s1226_s8, 256  ;;  %s1093_s7 = smov [#allocation6]  }
  0x39   : > { %p956_p1 = scmp.ne.s32.totalorder %s1226_s8, %s955_s5  ;;  %s960_s18 = sshll.u32 %s1093_s7, 4  ;;  %s961_s18 = int_to_ptr.vmem [resolvable:$false] %s960_s18 }
  0x3a   : > { %s962_s19 = scalar_lea.vmem %s961_s18, 512  ;;  %p963_p2 = scmp.lt.s32.totalorder %s1226_s8, %s961_s18 }
  0x3b   : > { %p958_p9 = pnand %p956_p1, %p942_p6  ;;  %p964_p3 = scmp.lt.s32.totalorder %s962_s19, %s955_s5 }
  0x3d   : > { %p959_p7 = pneg %p958_p9  ;;  %p965_p4 = por %p964_p3, %p963_p2 }
  0x3f   : > { %p966_p12 = pnand %p965_p4, %p959_p7 }
  0x41   : > { %969 = shalt.err (!%p966_p12)
}
  0x42   : > { %865 = dma.hbm_to_vmem [thread:$0]  (!%p1232_p10), %s1224_s6, 256, %s1226_s8, %s168_s10  }
  0x43   : > { %s846_s11 = sshll.u32 %s1086_s16, 7  ;;  %s192_s27 = scalar_lea.vmem [#allocation7], %s801_s20 }
  0x44   : > { %s202_s29 = sshll.u32 %s192_s27, 4  ;;  %s1269_s5 = scalar_lea.hbm %s1535_s2, %s846_s11  ;;  %s203_s29 = int_to_ptr.vmem [resolvable:$true] %s202_s29 }
  0x45   : > { %s189_s18 = scalar_lea.sflag [#allocation8], %s1198_s28  ;;  %s970_s19 = scalar_lea.hbm %s1269_s5, 128 }
  0x46   : > { %p971_p2 = scmp.ne.s32.totalorder %s1269_s5, %s970_s19  ;;  %s975_s20 = scalar_lea.hbm %s1535_s2, 256 }
  0x47   : > { %p976_p0 = scmp.lt.u32.totalorder %s1269_s5, %s1535_s2  ;;  %p977_p13 = scmp.lt.u32.totalorder %s975_s20, %s970_s19 }
  0x48   : > { %p973_p7 = pnand %p971_p2, %p942_p6  ;;  %p979_p1 = scmp.lt.u32.totalorder %s970_s19, %s1269_s5 }
  0x49   : > { %p978_p5 = por %p977_p13, %p976_p0 }
  0x4a   : > { %p974_p8 = pneg %p973_p7 }
  0x4b   : > { %p980_p9 = por %p979_p1, %p978_p5 }
  0x4d   : > { %p981_p3 = pnand %p980_p9, %p974_p8 }
  0x4f   : > { %984 = shalt.err (!%p981_p3)
}
  0x50   : > { %s985_s28 = scalar_lea.vmem %s203_s29, 128  ;;  %s1094_s11 = smov [#allocation7]  }
  0x51   : > { %p986_p4 = scmp.ne.s32.totalorder %s203_s29, %s985_s28  ;;  %s990_s4 = sshll.u32 %s1094_s11, 4  ;;  %s991_s4 = int_to_ptr.vmem [resolvable:$false] %s990_s4 }
  0x52   : > { %s992_s7 = scalar_lea.vmem %s991_s4, 256  ;;  %p993_p7 = scmp.lt.s32.totalorder %s203_s29, %s991_s4 }
  0x53   : > { %p988_p12 = pnand %p986_p4, %p942_p6  ;;  %p994_p11 = scmp.lt.s32.totalorder %s992_s7, %s985_s28 }
  0x55   : > { %p989_p2 = pneg %p988_p12  ;;  %p995_p0 = por %p994_p11, %p993_p7 }
  0x57   : > { %p996_p13 = pnand %p995_p0, %p989_p2 }
  0x59   : > { %999 = shalt.err (!%p996_p13)
}
  0x5a   : > { %868 = dma.hbm_to_vmem [thread:$0]  (!%p1232_p10), %s1269_s5, 128, %s203_s29, %s189_s18  }
  0x5b   : > { %p1549_p8 = scmp.ne.s32.totalorder %s1546_s25, 0 }
  0x5c   : > { %p1550_p5 = scmp.ne.s32.totalorder (!%p1549_p8), %s1542_s21, 0 }
  0x5d   : > { %211 = sbr.rel (%p1549_p8) target bundleno = 195 (0xc3), region = 32 }
  0x64   : > { %1053 = dma.done.wait (%p1550_p5), [#allocation5], 64  }
  0x65   : > { %1055 = vsyncadd (%p1550_p5), [#allocation5], 4294967232  ;;  %s1298_s19 = sand.u32 1, %s1074_s13   ;;  %p1551_p11 = scmp.ne.s32.totalorder %s1543_s22, 0 }
  0x66   : > { %s806_s6 = sshll.u32 %s1298_s19, 4  ;;  %s218_s8 = scalar_lea.sflag [#allocation3], %s1298_s19 }
  0x67   : > { %s221_s9 = scalar_lea.vmem [#allocation6], %s806_s6 }
  0x68   : > { %1057 = dma.done.wait (%p1551_p11), %s218_s8, 256  }
  0x69   : > { %1059 = vsyncadd (%p1551_p11), %s218_s8, 4294967040  ;;  %s807_s21 = sshll.u32 %s1298_s19, 3  ;;  %s227_s25 = scalar_lea.sflag [#allocation8], %s1298_s19 }
  0x6a   : > { %s1310_s29 = scalar_lea.vmem [#allocation7], %s807_s21 }
  0x6b   : > { %1061 = dma.done.wait (%p1551_p11), %s227_s25, 128  }
  0x6c   : > { %1063 = vsyncadd (%p1551_p11), %s227_s25, 4294967168 }
  0x6d   : > { %235 = sfence }
  0x6e   : > { %s265_s5 = sld [smem:[#allocation2]]  ;;  %s809_s18 = sld [smem:[#allocation2 + $0x1]]  ;;  %v1320_v0 = vld [vmem:[%s221_s9] sm:$0xff]  ;;  %v1322_v1 = vld [vmem:[%s221_s9 + $0x8] sm:$0xff]  ;;  %vm635_vm0 = vcmask 1040384   ;;  %vm638_vm1 = vcmask 1041408  }
  0x6f   : > { %s810_s20 = sld [smem:[#allocation2 + $0x2]]  ;;  %s811_s10 = sld [smem:[#allocation2 + $0x3]]  ;;  %vm641_vm2 = vcmask 1042432  }
  0x70   : > { %s812_s27 = sld [smem:[#allocation2 + $0x4]]  ;;  %s1316_s28 = sld [smem:[#allocation2 + $0x5]] }
  0x71   : > { %s1318_s11 = sld [smem:[#allocation2 + $0x6]]  ;;  %s1326_s22 = sld [smem:[#allocation2 + $0x7]] }
  0x72   : > { %s1328_s4 = sld [smem:[#allocation2 + $0x80]]  ;;  %s1336_s7 = sld [smem:[#allocation2 + $0x81]] }
  0x73   : > { %s1338_s6 = sld [smem:[#allocation2 + $0x82]]  ;;  %s1344_s8 = sld [smem:[#allocation2 + $0x83]] }
  0x74   : > { %v266_v2 = vstv %s265_s5  ;;  %v270_v5 = vstv %s809_s18  ;;  %s1346_s9 = sld [smem:[#allocation2 + $0x84]]  ;;  %s1358_s25 = sld [smem:[#allocation2 + $0x85]] }
  0x75   : > { %v267_v3 = vmul.f32 %v266_v2, %v1320_v0  ;;  %v268_v4 = vmul.f32 %v266_v2, %v1322_v1  ;;  %v282_v6 = vstv %s810_s20  ;;  %v271_v7 = vmul.f32 %v270_v5, %v1320_v0  ;;  %s1360_s5 = sld [smem:[#allocation2 + $0x86]]  ;;  %s1372_s18 = sld [smem:[#allocation2 + $0x87]] }
  0x76   : > { %v272_v8 = vmul.f32 %v270_v5, %v1322_v1  ;;  %v283_v9 = vmul.f32 %v282_v6, %v1320_v0  ;;  %v284_v10 = vmul.f32 %v282_v6, %v1322_v1  ;;  %v294_v11 = vstv %s811_s10  ;;  %s1374_s20 = sld [smem:[#allocation2 + $0x100]]  ;;  %s1376_s10 = sld [smem:[#allocation2 + $0x101]] }
  0x77   : > { %v306_v12 = vstv %s812_s27  ;;  %v318_v13 = vstv %s1316_s28  ;;  %v330_v14 = vstv %s1318_s11  ;;  %v275_v15 = vrot.slane %v271_v7, 1  ;;  %s1378_s27 = sld [smem:[#allocation2 + $0x102]]  ;;  %s1390_s28 = sld [smem:[#allocation2 + $0x103]] }
  0x78   : > { %v276_v16 = vrot.slane %v272_v8, 1  ;;  %v287_v17 = vrot.slane %v283_v9, 2  ;;  %v288_v18 = vrot.slane %v284_v10, 2  ;;  %v295_v19 = vmul.f32 %v294_v11, %v1320_v0  ;;  %s1392_s11 = sld [smem:[#allocation2 + $0x104]]  ;;  %p1552_p6 = scmp.ne.s32.totalorder %s1544_s23, 0 }
  0x79   : > { %v296_v20 = vmul.f32 %v294_v11, %v1322_v1  ;;  %v307_v21 = vmul.f32 %v306_v12, %v1320_v0  ;;  %v308_v22 = vmul.f32 %v306_v12, %v1322_v1  ;;  %v279_v23 = vadd.f32 %v275_v15, %v267_v3 }
  0x7a   : > { %v280_v24 = vadd.f32 %v276_v16, %v268_v4  ;;  %v319_v25 = vmul.f32 %v318_v13, %v1320_v0  ;;  %v320_v26 = vmul.f32 %v318_v13, %v1322_v1  ;;  %v299_v27 = vrot.slane %v295_v19, 3 }
  0x7b   : > { %v300_v28 = vrot.slane %v296_v20, 3  ;;  %v311_v29 = vrot.slane %v307_v21, 4  ;;  %v312_v30 = vrot.slane %v308_v22, 4  ;;  %v291_v31 = vadd.f32 %v287_v17, %v279_v23 }
  0x7c   : > { %v292_v32 = vadd.f32 %v288_v18, %v280_v24  ;;  %v323_v33 = vrot.slane %v319_v25, 5  ;;  %v324_v34 = vrot.slane %v320_v26, 5  ;;  %v331_v35 = vmul.f32 %v330_v14, %v1320_v0 }
  0x7d   : > { %v332_v36 = vmul.f32 %v330_v14, %v1322_v1  ;;  %v342_v37 = vstv %s1326_s22  ;;  %v354_v38 = vstv %s1328_s4  ;;  %v303_v39 = vadd.f32 %v299_v27, %v291_v31  ;;  %s1400_s22 = sld [smem:[#allocation2 + $0x105]]  ;;  %s1402_s4 = sld [smem:[#allocation2 + $0x106]] }
  0x7e   : > { %v304_v40 = vadd.f32 %v300_v28, %v292_v32  ;;  %v343_v41 = vmul.f32 %v342_v37, %v1320_v0  ;;  %v344_v42 = vmul.f32 %v342_v37, %v1322_v1  ;;  %v335_v43 = vrot.slane %v331_v35, 6 }
  0x7f   : > { %v336_v44 = vrot.slane %v332_v36, 6  ;;  %v355_v45 = vmul.f32 %v354_v38, %v1320_v0  ;;  %v356_v46 = vmul.f32 %v354_v38, %v1322_v1  ;;  %v315_v47 = vadd.f32 %v311_v29, %v303_v39 }
  0x80   : > { %v316_v48 = vadd.f32 %v312_v30, %v304_v40  ;;  %v347_v49 = vrot.slane %v343_v41, 7  ;;  %v348_v50 = vrot.slane %v344_v42, 7  ;;  %v358_v51 = vstv %s1336_s7  ;;  %s1412_s7 = sld [smem:[#allocation2 + $0x107]] }
  0x81   : > { %v370_v52 = vstv %s1338_s6  ;;  %v382_v53 = vstv %s1344_s8  ;;  %v394_v54 = vstv %s1346_s9  ;;  %v327_v55 = vadd.f32 %v323_v33, %v315_v47  ;;  %s1414_s6 = sld [smem:[#allocation2 + $0x180]]  ;;  %s1424_s8 = sld [smem:[#allocation2 + $0x181]] }
  0x82   : > { %v328_v56 = vadd.f32 %v324_v34, %v316_v48  ;;  %v359_v57 = vmul.f32 %v358_v51, %v1320_v0  ;;  %v360_v58 = vmul.f32 %v358_v51, %v1322_v1  ;;  %v371_v59 = vmul.f32 %v370_v52, %v1320_v0  ;;  %s1426_s9 = sld [smem:[#allocation2 + $0x182]] }
  0x83   : > { %v372_v60 = vmul.f32 %v370_v52, %v1322_v1  ;;  %v383_v61 = vmul.f32 %v382_v53, %v1320_v0  ;;  %v384_v62 = vmul.f32 %v382_v53, %v1322_v1  ;;  %v339_v63 = vadd.f32 %v335_v43, %v327_v55 }
  0x84   : > { %v340_v2 = vadd.f32 %v336_v44, %v328_v56  ;;  %v363_v3 = vrot.slane %v359_v57, 1  ;;  %v364_v4 = vrot.slane %v360_v58, 1  ;;  %v375_v5 = vrot.slane %v371_v59, 2 }
  0x85   : > { %v376_v6 = vrot.slane %v372_v60, 2  ;;  %v387_v7 = vrot.slane %v383_v61, 3  ;;  %v388_v8 = vrot.slane %v384_v62, 3  ;;  %v1380_v9 = vadd.f32 %v347_v49, %v339_v63 }
  0x86   : > { %v1382_v10 = vadd.f32 %v348_v50, %v340_v2  ;;  %v367_v11 = vadd.f32 %v363_v3, %v355_v45  ;;  %v368_v12 = vadd.f32 %v364_v4, %v356_v46  ;;  %v395_v13 = vmul.f32 %v394_v54, %v1320_v0 }
  0x87   : > { %v396_v14 = vmul.f32 %v394_v54, %v1322_v1  ;;  %v406_v15 = vstv %s1358_s25  ;;  %v418_v16 = vstv %s1360_s5  ;;  %v430_v31 = vstv %s1372_s18  ;;  %s1432_s25 = sld [smem:[#allocation2 + $0x183]]  ;;  %s1434_s5 = sld [smem:[#allocation2 + $0x184]] }
  0x88   : > { %v379_v17 = vadd.f32 %v375_v5, %v367_v11  ;;  %v380_v18 = vadd.f32 %v376_v6, %v368_v12  ;;  %v407_v19 = vmul.f32 %v406_v15, %v1320_v0  ;;  %v408_v20 = vmul.f32 %v406_v15, %v1322_v1  ;;  %s1444_s18 = sld [smem:[#allocation2 + $0x185]] }
  0x89   : > { %v399_v21 = vrot.slane %v395_v13, 4  ;;  %v400_v22 = vrot.slane %v396_v14, 4  ;;  %v419_v23 = vmul.f32 %v418_v16, %v1320_v0  ;;  %v420_v24 = vmul.f32 %v418_v16, %v1322_v1 }
  0x8a   : > { %v391_v25 = vadd.f32 %v387_v7, %v379_v17  ;;  %v392_v26 = vadd.f32 %v388_v8, %v380_v18  ;;  %v411_v27 = vrot.slane %v407_v19, 5  ;;  %v412_v28 = vrot.slane %v408_v20, 5 }
  0x8b   : > { %v423_v29 = vrot.slane %v419_v23, 6  ;;  %v424_v30 = vrot.slane %v420_v24, 6  ;;  %v442_v32 = vstv %s1374_s20  ;;  %v431_v35 = vmul.f32 %v430_v31, %v1320_v0  ;;  %s1446_s20 = sld [smem:[#allocation2 + $0x186]] }
  0x8c   : > { %v403_v33 = vadd.f32 %v399_v21, %v391_v25  ;;  %v404_v34 = vadd.f32 %v400_v22, %v392_v26  ;;  %v432_v36 = vmul.f32 %v430_v31, %v1322_v1  ;;  %v443_v37 = vmul.f32 %v442_v32, %v1320_v0 }
  0x8d   : > { %v444_v38 = vmul.f32 %v442_v32, %v1322_v1  ;;  %v446_v39 = vstv %s1376_s10  ;;  %v458_v40 = vstv %s1378_s27  ;;  %v435_v43 = vrot.slane %v431_v35, 7  ;;  %s1456_s10 = sld [smem:[#allocation2 + $0x187]]  ;;  %s258_s27 = scalar_lea.vmem [#allocation9], %s807_s21 }
  0x8e   : > { %v415_v41 = vadd.f32 %v411_v27, %v403_v33  ;;  %v416_v42 = vadd.f32 %v412_v28, %v404_v34  ;;  %v436_v44 = vrot.slane %v432_v36, 7  ;;  %v447_v45 = vmul.f32 %v446_v39, %v1320_v0 }
  0x8f   : > { %v448_v46 = vmul.f32 %v446_v39, %v1322_v1  ;;  %v459_v47 = vmul.f32 %v458_v40, %v1320_v0  ;;  %v460_v48 = vmul.f32 %v458_v40, %v1322_v1  ;;  %v470_v51 = vstv %s1390_s28  ;;  %s671_s28 = sshll.u32 %s258_s27, 4  ;;  %s1486_s28 = int_to_ptr.vmem [resolvable:$true] %s671_s28 }
  0x90   : > { %v427_v49 = vadd.f32 %v423_v29, %v415_v41  ;;  %v428_v50 = vadd.f32 %v424_v30, %v416_v42  ;;  %v482_v52 = vstv %s1392_s11  ;;  %v451_v53 = vrot.slane %v447_v45, 1 }
  0x91   : > { %v452_v54 = vrot.slane %v448_v46, 1  ;;  %v463_v55 = vrot.slane %v459_v47, 2  ;;  %v464_v56 = vrot.slane %v460_v48, 2  ;;  %v471_v59 = vmul.f32 %v470_v51, %v1320_v0 }
  0x92   : > { %v1418_v57 = vadd.f32 %v435_v43, %v427_v49  ;;  %v1420_v58 = vadd.f32 %v436_v44, %v428_v50  ;;  %v472_v60 = vmul.f32 %v470_v51, %v1322_v1  ;;  %v455_v61 = vadd.f32 %v451_v53, %v443_v37 }
  0x93   : > { %v456_v62 = vadd.f32 %v452_v54, %v444_v38  ;;  %v483_v63 = vmul.f32 %v482_v52, %v1320_v0  ;;  %v484_v2 = vmul.f32 %v482_v52, %v1322_v1  ;;  %v475_v3 = vrot.slane %v471_v59, 3 }
  0x94   : > { %v476_v4 = vrot.slane %v472_v60, 3  ;;  %v494_v5 = vstv %s1400_s22  ;;  %v506_v6 = vstv %s1402_s4  ;;  %v467_v7 = vadd.f32 %v463_v55, %v455_v61 }
  0x95   : > { %v468_v8 = vadd.f32 %v464_v56, %v456_v62  ;;  %v487_v11 = vrot.slane %v483_v63, 4  ;;  %v488_v12 = vrot.slane %v484_v2, 4  ;;  %v495_v13 = vmul.f32 %v494_v5, %v1320_v0 }
  0x96   : > { %v496_v14 = vmul.f32 %v494_v5, %v1322_v1  ;;  %v507_v15 = vmul.f32 %v506_v6, %v1320_v0  ;;  %v508_v16 = vmul.f32 %v506_v6, %v1322_v1  ;;  %v479_v17 = vadd.f32 %v475_v3, %v467_v7 }
  0x97   : > { %v480_v18 = vadd.f32 %v476_v4, %v468_v8  ;;  %v518_v19 = vstv %s1412_s7  ;;  %v530_v20 = vstv %s1414_s6  ;;  %v499_v21 = vrot.slane %v495_v13, 5  ;;  %s655_s7 = scalar_lea.sflag [#allocation4], %s1298_s19  ;;  %s1000_s6 = scalar_lea.vmem %s1486_s28, 128 }
  0x98   : > { %v500_v22 = vrot.slane %v496_v14, 5  ;;  %v511_v23 = vrot.slane %v507_v15, 6  ;;  %v512_v24 = vrot.slane %v508_v16, 6  ;;  %v491_v25 = vadd.f32 %v487_v11, %v479_v17  ;;  %p1001_p10 = scmp.ne.s32.totalorder %s1486_s28, %s1000_s6 }
  0x99   : > { %v492_v26 = vadd.f32 %v488_v12, %v480_v18  ;;  %v519_v27 = vmul.f32 %v518_v19, %v1320_v0  ;;  %v520_v28 = vmul.f32 %v518_v19, %v1322_v1  ;;  %v531_v29 = vmul.f32 %v530_v20, %v1320_v0 }
  0x9a   : > { %v532_v30 = vmul.f32 %v530_v20, %v1322_v1  ;;  %v534_v31 = vstv %s1424_s8  ;;  %v546_v32 = vstv %s1426_s9  ;;  %v503_v33 = vadd.f32 %v499_v21, %v491_v25  ;;  %p1002_p1 = pnand %p1001_p10, %p1552_p6 }
  0x9b   : > { %v504_v34 = vadd.f32 %v500_v22, %v492_v26  ;;  %v523_v35 = vrot.slane %v519_v27, 7  ;;  %v524_v36 = vrot.slane %v520_v28, 7  ;;  %v535_v37 = vmul.f32 %v534_v31, %v1320_v0 }
  0x9c   : > { %v536_v38 = vmul.f32 %v534_v31, %v1322_v1  ;;  %v547_v39 = vmul.f32 %v546_v32, %v1320_v0  ;;  %v548_v40 = vmul.f32 %v546_v32, %v1322_v1  ;;  %v515_v41 = vadd.f32 %v511_v23, %v503_v33  ;;  %p1003_p9 = pneg %p1002_p1 }
  0x9d   : > { %v516_v42 = vadd.f32 %v512_v24, %v504_v34  ;;  %v558_v43 = vstv %s1432_s25  ;;  %v570_v44 = vstv %s1434_s5  ;;  %v539_v45 = vrot.slane %v535_v37, 1 }
  0x9e   : > { %v540_v46 = vrot.slane %v536_v38, 1  ;;  %v551_v47 = vrot.slane %v547_v39, 2  ;;  %v552_v48 = vrot.slane %v548_v40, 2  ;;  %v527_v49 = vadd.f32 %v523_v35, %v515_v41 }
  0x9f   : > { %v528_v50 = vadd.f32 %v524_v36, %v516_v42  ;;  %v559_v51 = vmul.f32 %v558_v43, %v1320_v0  ;;  %v560_v52 = vmul.f32 %v558_v43, %v1322_v1  ;;  %v543_v53 = vadd.f32 %v539_v45, %v531_v29  ;;  %v264_v29 = vld [vmem:[%s1310_s29] sm:$0xff]  ;;  %s847_s29 = sshll.u32 %s1082_s15, 7  ;;  %s1095_s15 = smov [#allocation9]  }
  0xa0   : > { %v544_v54 = vadd.f32 %v540_v46, %v532_v30  ;;  %v571_v55 = vmul.f32 %v570_v44, %v1320_v0  ;;  %v572_v56 = vmul.f32 %v570_v44, %v1322_v1  ;;  %v582_v61 = vstv %s1444_s18  ;;  %s1484_s4 = scalar_lea.hbm %s1536_s3, %s847_s29  ;;  %s1004_s21 = sshll.u32 %s1095_s15, 4  ;;  %s1005_s21 = int_to_ptr.vmem [resolvable:$false] %s1004_s21 }
  0xa1   : > { %v563_v59 = vrot.slane %v559_v51, 3  ;;  %v564_v60 = vrot.slane %v560_v52, 3  ;;  %v594_v62 = vstv %s1446_s20  ;;  %v555_v63 = vadd.f32 %v551_v47, %v543_v53  ;;  %s1006_s8 = scalar_lea.vmem %s1005_s21, 256  ;;  %p1007_p3 = scmp.lt.s32.totalorder %s1486_s28, %s1005_s21 }
  0xa2   : > { %v556_v2 = vadd.f32 %v552_v48, %v544_v54  ;;  %v575_v3 = vrot.slane %v571_v55, 4  ;;  %v576_v4 = vrot.slane %v572_v56, 4  ;;  %v583_v5 = vmul.f32 %v582_v61, %v1320_v0  ;;  %p1008_p4 = scmp.lt.s32.totalorder %s1006_s8, %s1000_s6 }
  0xa3   : > { %v584_v6 = vmul.f32 %v582_v61, %v1322_v1  ;;  %v595_v7 = vmul.f32 %v594_v62, %v1320_v0  ;;  %v596_v8 = vmul.f32 %v594_v62, %v1322_v1  ;;  %v567_v11 = vadd.f32 %v563_v59, %v555_v63 }
  0xa4   : > { %v568_v12 = vadd.f32 %v564_v60, %v556_v2  ;;  %v606_v13 = vstv %s1456_s10  ;;  %v619_v14 = vrot.slane %v1418_v57, 7  ;;  %v587_v15 = vrot.slane %v583_v5, 5  ;;  %p1009_p12 = por %p1008_p4, %p1007_p3 }
  0xa5   : > { %v588_v16 = vrot.slane %v584_v6, 5  ;;  %v599_v17 = vrot.slane %v595_v7, 6  ;;  %v600_v18 = vrot.slane %v596_v8, 6  ;;  %v579_v19 = vadd.f32 %v575_v3, %v567_v11 }
  0xa6   : > { %v580_v20 = vadd.f32 %v576_v4, %v568_v12  ;;  %v607_v21 = vmul.f32 %v606_v13, %v1320_v0  ;;  %v608_v22 = vmul.f32 %v606_v13, %v1322_v1  ;;  %v620_v23 = vrot.slane %v1420_v58, 7  ;;  %p1010_p2 = pnand %p1009_p12, %p1003_p9 }
  0xa7   : > { %v591_v24 = vadd.f32 %v587_v15, %v579_v19  ;;  %v625_v28 = vrot.slane %v527_v49, 6  ;;  %v626_v57 = vrot.slane %v528_v50, 6  ;;  %v636_v32 = vsel %vm635_vm0, %v1380_v9, %v619_v14 }
  0xa8   : > { %v592_v25 = vadd.f32 %v588_v16, %v580_v20  ;;  %v611_v26 = vrot.slane %v607_v21, 7  ;;  %v612_v27 = vrot.slane %v608_v22, 7  ;;  %v637_v0 = vsel %vm635_vm0, %v1382_v10, %v620_v23 }
  0xa9   : > { %v603_v30 = vadd.f32 %v599_v17, %v591_v24  ;;  %v639_v58 = vsel %vm638_vm1, %v636_v32, %v625_v28  ;;  %v640_v34 = vsel %vm638_vm1, %v637_v0, %v626_v57  ;;  %v645_v35 = vcombine.high %v264_v29, %v264_v29 }
  0xaa   : > { %v604_v31 = vadd.f32 %v600_v18, %v592_v25 }
  0xab   : > { %v615_v1 = vadd.f32 %v611_v26, %v603_v30 }
  0xac   : > { %v616_v33 = vadd.f32 %v612_v27, %v604_v31 }
  0xad   : > { %v631_v36 = vrot.slane %v615_v1, 5 }
  0xae   : > { %v632_v37 = vrot.slane %v616_v33, 5 }
  0xaf   : > { %v642_v38 = vsel %vm641_vm2, %v639_v58, %v631_v36 }
  0xb0   : > { %v643_v39 = vsel %vm641_vm2, %v640_v34, %v632_v37  ;;  %v647_v40 = vadd.f32 %v642_v38, %v264_v29 }
  0xb1   : > { %v648_v9 = vadd.f32 %v645_v35, %v643_v39 }
  0xb3   : > { %v651_v41 = vcombine.low %v647_v40, %v648_v9 }
  0xb5   : > { %653 = vst [vmem:[%s258_s27] sm:$0xff] %v651_v41 }
  0xb6   : > { %1013 = shalt.err (!%p1010_p2)
}
  0xb7   : > { %s1014_s19 = scalar_lea.hbm %s1484_s4, 128  ;;  %s1018_s5 = scalar_lea.hbm %s1536_s3, 256 }
  0xb8   : > { %p1015_p7 = scmp.ne.s32.totalorder %s1484_s4, %s1014_s19  ;;  %p1019_p8 = scmp.lt.u32.totalorder %s1484_s4, %s1536_s3 }
  0xb9   : > { %p1020_p5 = scmp.lt.u32.totalorder %s1018_s5, %s1014_s19  ;;  %p1022_p10 = scmp.lt.u32.totalorder %s1014_s19, %s1484_s4 }
  0xba   : > { %p1016_p0 = pnand %p1015_p7, %p1552_p6 }
  0xbb   : > { %p1021_p11 = por %p1020_p5, %p1019_p8 }
  0xbc   : > { %p1017_p13 = pneg %p1016_p0 }
  0xbd   : > { %p1023_p1 = por %p1022_p10, %p1021_p11 }
  0xbf   : > { %p1024_p9 = pnand %p1023_p1, %p1017_p13 }
  0xc1   : > { %1027 = shalt.err (!%p1024_p9)
}
  0xc2   : > { %856 = dma.vmem_to_hbm [thread:$0]  (%p1552_p6), %s1486_s28, 128, %s1484_s4, %s655_s7  }
  0xc3 PF: > { %s683_s10 = sand.u32 1, %s1070_s12   ;;  %p1553_p3 = scmp.ne.s32.totalorder %s1545_s24, 0 }
  0xc4   : > { %p1554_p4 = scmp.ge.s32.totalorder %s1090_s17, 2  ;;  %s684_s29 = scalar_lea.sflag [#allocation4], %s683_s10 }
  0xc6   : > { %p870_p12 = pnand %p1554_p4, %p1553_p3 }
  0xc8   : > { %1065 = dma.done.wait (!%p870_p12), %s684_s29, 128  }
  0xc9   : > { %1067 = vsyncadd (!%p870_p12), %s684_s29, 4294967168  ;;  %s23_s17 = sadd.s32 1, %s1090_s17   ;;  %s1555_s12 = smov %s1074_s13 }
  0xca   : > { %p20_p2 = scmp.ge.s32.totalorder %s23_s17, 4   ;;  %s1556_s13 = smov %s1078_s14 }
  0xcb   : > { %s1557_s14 = smov %s1219_s30  ;;  %s1558_s15 = smov %s1086_s16 }
  0xcc   : > { %s1559_s16 = smov %s1561_s26  ;;  %22 = sbr.rel (!%p20_p2) target bundleno = 9 (0x9), region = 95 }
  0xd3   :  { %689 = vsyncpa [#allocation3], 1 }
  0xd4   :  { %691 = vsyncpa [#allocation3 + $0x1], 1 }
  0xd5   :  { %692 = vsyncpa [#allocation8], 1 }
  0xd6   :  { %694 = vsyncpa [#allocation8 + $0x1], 1 }
  0xd7   :  { %695 = vsyncpa [#allocation4], 1 }
  0xd8   :  { %697 = vsyncpa [#allocation4 + $0x1], 1 }
  0xd9   :  { %698 = vsyncpa [#allocation5], 1 }
  0xda   :  { %700 = vsyncpa [#allocation5 + $0x1], 1 }

</bundles_post_ra>
